<compile_context>
chip_gen: v5e
topology: v5e:2x2
jax: 0.10.0
libtpu: 0.0.40
codegen_flags: <defaults>
</compile_context>

<pallas_src>
import jax
import jax.numpy as jnp
from jax import lax
from jax.experimental import pallas as pl
from jax.experimental.pallas import tpu as pltpu  # noqa: F401  (TPU backend assumed)

_LANE = 128


def _round_up(x, m):
    return ((x + m - 1) // m) * m


def _full_spec(shape):
    # Single block covering the whole (small) array; block == full array dims is always legal.
    return pl.BlockSpec(shape, lambda: (0,) * len(shape))


# ---------------------------------------------------------------------------
# Fused forward kernel (all GraphConv layers + policy/value heads)
# ---------------------------------------------------------------------------
def _make_fused_kernel(n_layers, use_activation, n_nodes):
    def kernel(*refs):
        # refs: at, xt, (wt_0, bt_0, ..., wt_{L-1}, bt_{L-1}), wp, bp, wv, bv, out
        at_ref = refs[0]                                    # (Np, Np)  A^T (zero padded)
        xt_ref = refs[1]                                    # (in_feats, Np)  features^T
        layer_refs = refs[2:2 + 2 * n_layers]
        wp_ref, bp_ref, wv_ref, bv_ref = refs[2 + 2 * n_layers: 2 + 2 * n_layers + 4]
        out_ref = refs[-1]                                  # (1, Np) packed [PI..., V, 0...]

        at = at_ref[...]
        ht = xt_ref[...]                                    # h^T, nodes on the lane axis

        for i in range(n_layers):
            wt = layer_refs[2 * i][...]                     # (d_out, d_in) == W^T
            bt = layer_refs[2 * i + 1][...]                 # (d_out, 1)    == b^T
            d_out, d_in = wt.shape
            # h_new = A @ h @ W   <=>   ht_new = W^T @ ht @ A^T
            # associate so the Np x Np contraction runs over min(d_in, d_out) rows
            if d_in <= d_out:
                agg = jnp.dot(ht, at, preferred_element_type=jnp.float32)        # (d_in, Np)
                ht = jnp.dot(wt, agg, preferred_element_type=jnp.float32) + bt   # (d_out, Np)
            else:
                hw = jnp.dot(wt, ht, preferred_element_type=jnp.float32)         # (d_out, Np)
                ht = jnp.dot(hw, at, preferred_element_type=jnp.float32) + bt    # (d_out, Np)
            if use_activation and (n_layers > 1) and (i != n_layers - 1):
                ht = jnp.maximum(ht, 0.0)

        n_pad = ht.shape[1]
        lane_idx = lax.broadcasted_iota(jnp.int32, (1, n_pad), 1)
        node_mask = (lane_idx < n_nodes).astype(jnp.float32)                     # real nodes only

        # Policy head on VPU/XLU:  PI^T = sum_f ht[f, :] * wp[f] + bp  -> (1, Np), lane-dense.
        pi_row = jnp.sum(ht * wp_ref[...], axis=0, keepdims=True) + bp_ref[...]
        # Value head: mean over real nodes (masked lane reduce), then feature reduce vs wv.
        mn_t = jnp.sum(ht * node_mask, axis=1, keepdims=True) / float(n_nodes)   # (out_feats, 1)
        v = jnp.sum(mn_t * wv_ref[...], axis=0, keepdims=True) + bv_ref[...]     # (1, 1)

        # Pack PI (lanes 0..N-1) and V (lane N) into a single lane-dense slab.
        out_ref[...] = jnp.where(lane_idx < n_nodes, pi_row,
                                 jnp.where(lane_idx == n_nodes, v, 0.0))

    return kernel


# ---------------------------------------------------------------------------
# Parameter init (deterministic, matches the module's shapes)
# ---------------------------------------------------------------------------
def gcn_init_params(key, in_feats, hid_feats, out_feats, n_layers):
    if n_layers == 1:
        hid_feats = out_feats
    dims = []
    for i in range(n_layers):
        d_in = in_feats if i == 0 else hid_feats
        d_out = out_feats if i == n_layers - 1 else hid_feats
        dims.append((d_in, d_out))

    params = {"layers": []}
    keys = jax.random.split(key, n_layers + 2)
    for i, (d_in, d_out) in enumerate(dims):
        w = jax.random.normal(keys[i], (d_in, d_out), jnp.float32) * 0.1
        b = jnp.zeros((1, d_out), jnp.float32)
        params["layers"].append((w, b))
    params["policy_w"] = jax.random.normal(keys[-2], (dims[-1][1], 1), jnp.float32) * 0.1
    params["policy_b"] = jnp.zeros((1, 1), jnp.float32)
    params["value_w"] = jax.random.normal(keys[-1], (dims[-1][1], 1), jnp.float32) * 0.1
    params["value_b"] = jnp.zeros((1, 1), jnp.float32)
    return params


# ---------------------------------------------------------------------------
# Forward wrapper: layout plumbing (pad/transpose) in plain JAX, compute in Pallas
# ---------------------------------------------------------------------------
def gcn_forward(params, adj, features, n_layers, use_activation=True):
    n, in_feats = features.shape
    n_pad = _round_up(n + 1, _LANE)          # +1 lane reserved for V in the packed slab

    # Nodes go on the lane axis, zero-padded to n_pad (padded nodes have no edges,
    # so they never influence real nodes; the mean is masked inside the kernel).
    at = jnp.zeros((n_pad, n_pad), jnp.float32).at[:n, :n].set(adj).T
    xt = jnp.zeros((in_feats, n_pad), jnp.float32).at[:, :n].set(features.T)

    kern_inputs = [at, xt]
    in_specs = [_full_spec(at.shape), _full_spec(xt.shape)]
    for (w, b) in params["layers"]:
        wt = w.T                              # (d_out, d_in)
        bt = b.reshape(-1, 1)                 # (d_out, 1)
        kern_inputs += [wt, bt]
        in_specs += [_full_spec(wt.shape), _full_spec(bt.shape)]
    head_inputs = [params["policy_w"], params["policy_b"].reshape(1, 1),
                   params["value_w"], params["value_b"].reshape(1, 1)]
    kern_inputs += head_inputs
    in_specs += [_full_spec(x.shape) for x in head_inputs]

    kernel = _make_fused_kernel(n_layers, use_activation, n)
    slab = pl.pallas_call(
        kernel,
        out_shape=jax.ShapeDtypeStruct((1, n_pad), jnp.float32),
        in_specs=in_specs,
        out_specs=_full_spec((1, n_pad)),
    )(*kern_inputs)

    pi = slab[0, :n].reshape(n, 1)
    v = slab[0:1, n:n + 1]
    return pi, v


# ---------------------------------------------------------------------------
# Pure-JAX reference for a correctness sanity check
# ---------------------------------------------------------------------------
def gcn_reference(params, adj, features, n_layers, use_activation=True):
    h = features
    for i, (w, b) in enumerate(params["layers"]):
        h = adj @ (h @ w) + b
        if use_activation and (n_layers > 1) and (i != n_layers - 1):
            h = jnp.maximum(h, 0.0)
    pi = h @ params["policy_w"] + params["policy_b"]
    mn = jnp.mean(h, axis=0, keepdims=True)
    v = mn @ params["value_w"] + params["value_b"]
    return pi, v


if __name__ == "__main__":
    key = jax.random.PRNGKey(0)
    k_graph, k_feat, k_param = jax.random.split(key, 3)

    # Small synthetic graph: N nodes, dense adjacency (norm='none', no self-loop norm)
    N, IN_FEATS, HID_FEATS, OUT_FEATS, N_LAYERS = 16, 8, 32, 16, 3

    adj = (jax.random.uniform(k_graph, (N, N)) < 0.3).astype(jnp.float32)
    features = jax.random.normal(k_feat, (N, IN_FEATS), jnp.float32)
    params = gcn_init_params(k_param, IN_FEATS, HID_FEATS, OUT_FEATS, N_LAYERS)

    pi, v = gcn_forward(params, adj, features, N_LAYERS)
    jax.block_until_ready((pi, v))

    pi_ref, v_ref = gcn_reference(params, adj, features, N_LAYERS)
    assert pi.shape == (N, 1) and v.shape == (1, 1)
    assert jnp.allclose(pi, pi_ref, atol=1e-2, rtol=1e-2)
    assert jnp.allclose(v, v_ref, atol=1e-2, rtol=1e-2)
    print("KERNEL_OK")
</pallas_src>

<mosaic_0001>
module attributes {stable_mosaic.version = 11 : i64} {
  func.func @kernel(%arg0: memref<128x128xf32, #tpu.memory_space<vmem>>, %arg1: memref<8x128xf32, #tpu.memory_space<vmem>>, %arg2: memref<32x8xf32, #tpu.memory_space<vmem>>, %arg3: memref<32x1xf32, #tpu.memory_space<vmem>>, %arg4: memref<32x32xf32, #tpu.memory_space<vmem>>, %arg5: memref<32x1xf32, #tpu.memory_space<vmem>>, %arg6: memref<16x32xf32, #tpu.memory_space<vmem>>, %arg7: memref<16x1xf32, #tpu.memory_space<vmem>>, %arg8: memref<16x1xf32, #tpu.memory_space<vmem>>, %arg9: memref<1x1xf32, #tpu.memory_space<vmem>>, %arg10: memref<16x1xf32, #tpu.memory_space<vmem>>, %arg11: memref<1x1xf32, #tpu.memory_space<vmem>>, %arg12: memref<1x128xf32, #tpu.memory_space<vmem>>) attributes {dimension_semantics = [], scalar_prefetch = 0 : i64, scratch_operands = 0 : i64, tpu.core_type = #tpu.core_type<tc>} {
    %c0 = arith.constant 0 : index
    %c0_0 = arith.constant 0 : index
    %0 = vector.load %arg0[%c0, %c0_0] : memref<128x128xf32, #tpu.memory_space<vmem>>, vector<128x128xf32>
    %c0_1 = arith.constant 0 : index
    %c0_2 = arith.constant 0 : index
    %1 = vector.load %arg1[%c0_1, %c0_2] : memref<8x128xf32, #tpu.memory_space<vmem>>, vector<8x128xf32>
    %c0_3 = arith.constant 0 : index
    %c0_4 = arith.constant 0 : index
    %2 = vector.load %arg2[%c0_3, %c0_4] : memref<32x8xf32, #tpu.memory_space<vmem>>, vector<32x8xf32>
    %c0_5 = arith.constant 0 : index
    %c0_6 = arith.constant 0 : index
    %3 = vector.load %arg3[%c0_5, %c0_6] : memref<32x1xf32, #tpu.memory_space<vmem>>, vector<32x1xf32>
    %cst = arith.constant dense<0.000000e+00> : vector<8x128xf32>
    %4 = tpu.matmul %1, %0, %cst {dimension_numbers = #tpu.dot_dimension_numbers<[1], [0], [0], [1], [0, 0, 1, 1], [], []>} : vector<8x128xf32>, vector<128x128xf32>, vector<8x128xf32> -> vector<8x128xf32>
    %cst_7 = arith.constant dense<0.000000e+00> : vector<32x128xf32>
    %5 = tpu.matmul %2, %4, %cst_7 {dimension_numbers = #tpu.dot_dimension_numbers<[1], [0], [0], [1], [0, 0, 1, 1], [], []>} : vector<32x8xf32>, vector<8x128xf32>, vector<32x128xf32> -> vector<32x128xf32>
    %6 = vector.broadcast %3 : vector<32x1xf32> to vector<32x128xf32>
    %7 = arith.addf %5, %6 : vector<32x128xf32>
    %cst_8 = arith.constant 0.000000e+00 : f32
    %8 = vector.broadcast %cst_8 : f32 to vector<32x128xf32>
    %9 = arith.maximumf %7, %8 : vector<32x128xf32>
    %c0_9 = arith.constant 0 : index
    %c0_10 = arith.constant 0 : index
    %10 = vector.load %arg4[%c0_9, %c0_10] : memref<32x32xf32, #tpu.memory_space<vmem>>, vector<32x32xf32>
    %c0_11 = arith.constant 0 : index
    %c0_12 = arith.constant 0 : index
    %11 = vector.load %arg5[%c0_11, %c0_12] : memref<32x1xf32, #tpu.memory_space<vmem>>, vector<32x1xf32>
    %cst_13 = arith.constant dense<0.000000e+00> : vector<32x128xf32>
    %12 = tpu.matmul %9, %0, %cst_13 {dimension_numbers = #tpu.dot_dimension_numbers<[1], [0], [0], [1], [0, 0, 1, 1], [], []>} : vector<32x128xf32>, vector<128x128xf32>, vector<32x128xf32> -> vector<32x128xf32>
    %cst_14 = arith.constant dense<0.000000e+00> : vector<32x128xf32>
    %13 = tpu.matmul %10, %12, %cst_14 {dimension_numbers = #tpu.dot_dimension_numbers<[1], [0], [0], [1], [0, 0, 1, 1], [], []>} : vector<32x32xf32>, vector<32x128xf32>, vector<32x128xf32> -> vector<32x128xf32>
    %14 = vector.broadcast %11 : vector<32x1xf32> to vector<32x128xf32>
    %15 = arith.addf %13, %14 : vector<32x128xf32>
    %cst_15 = arith.constant 0.000000e+00 : f32
    %16 = vector.broadcast %cst_15 : f32 to vector<32x128xf32>
    %17 = arith.maximumf %15, %16 : vector<32x128xf32>
    %c0_16 = arith.constant 0 : index
    %c0_17 = arith.constant 0 : index
    %18 = vector.load %arg6[%c0_16, %c0_17] : memref<16x32xf32, #tpu.memory_space<vmem>>, vector<16x32xf32>
    %c0_18 = arith.constant 0 : index
    %c0_19 = arith.constant 0 : index
    %19 = vector.load %arg7[%c0_18, %c0_19] : memref<16x1xf32, #tpu.memory_space<vmem>>, vector<16x1xf32>
    %cst_20 = arith.constant dense<0.000000e+00> : vector<16x128xf32>
    %20 = tpu.matmul %18, %17, %cst_20 {dimension_numbers = #tpu.dot_dimension_numbers<[1], [0], [0], [1], [0, 0, 1, 1], [], []>} : vector<16x32xf32>, vector<32x128xf32>, vector<16x128xf32> -> vector<16x128xf32>
    %cst_21 = arith.constant dense<0.000000e+00> : vector<16x128xf32>
    %21 = tpu.matmul %20, %0, %cst_21 {dimension_numbers = #tpu.dot_dimension_numbers<[1], [0], [0], [1], [0, 0, 1, 1], [], []>} : vector<16x128xf32>, vector<128x128xf32>, vector<16x128xf32> -> vector<16x128xf32>
    %22 = vector.broadcast %19 : vector<16x1xf32> to vector<16x128xf32>
    %23 = arith.addf %21, %22 : vector<16x128xf32>
    %24 = tpu.iota {dimensions = array<i32: 1>} : vector<1x128xi32>
    %c16_i32 = arith.constant 16 : i32
    %25 = vector.broadcast %c16_i32 : i32 to vector<1x128xi32>
    %26 = arith.cmpi slt, %24, %25 : vector<1x128xi32>
    %27 = arith.extui %26 : vector<1x128xi1> to vector<1x128xi32>
    %28 = arith.sitofp %27 : vector<1x128xi32> to vector<1x128xf32>
    %c0_22 = arith.constant 0 : index
    %c0_23 = arith.constant 0 : index
    %29 = vector.load %arg8[%c0_22, %c0_23] : memref<16x1xf32, #tpu.memory_space<vmem>>, vector<16x1xf32>
    %30 = vector.broadcast %29 : vector<16x1xf32> to vector<16x128xf32>
    %31 = arith.mulf %23, %30 : vector<16x128xf32>
    %cst_24 = arith.constant dense<0.000000e+00> : vector<128xf32>
    %32 = vector.multi_reduction <add>, %31, %cst_24 [0] : vector<16x128xf32> to vector<128xf32>
    %33 = vector.shape_cast %32 : vector<128xf32> to vector<1x128xf32>
    %c0_25 = arith.constant 0 : index
    %c0_26 = arith.constant 0 : index
    %34 = vector.load %arg9[%c0_25, %c0_26] : memref<1x1xf32, #tpu.memory_space<vmem>>, vector<1x1xf32>
    %35 = vector.broadcast %34 : vector<1x1xf32> to vector<1x128xf32>
    %36 = arith.addf %33, %35 : vector<1x128xf32>
    %37 = vector.broadcast %28 : vector<1x128xf32> to vector<16x128xf32>
    %38 = arith.mulf %23, %37 : vector<16x128xf32>
    %cst_27 = arith.constant dense<0.000000e+00> : vector<16xf32>
    %39 = vector.multi_reduction <add>, %38, %cst_27 [1] : vector<16x128xf32> to vector<16xf32>
    %40 = vector.shape_cast %39 : vector<16xf32> to vector<16x1xf32>
    %cst_28 = arith.constant 1.600000e+01 : f32
    %41 = vector.broadcast %cst_28 : f32 to vector<16x1xf32>
    %42 = arith.divf %40, %41 : vector<16x1xf32>
    %c0_29 = arith.constant 0 : index
    %c0_30 = arith.constant 0 : index
    %43 = vector.load %arg10[%c0_29, %c0_30] : memref<16x1xf32, #tpu.memory_space<vmem>>, vector<16x1xf32>
    %44 = arith.mulf %42, %43 : vector<16x1xf32>
    %cst_31 = arith.constant dense<0.000000e+00> : vector<1xf32>
    %45 = vector.multi_reduction <add>, %44, %cst_31 [0] : vector<16x1xf32> to vector<1xf32>
    %46 = vector.shape_cast %45 : vector<1xf32> to vector<1x1xf32>
    %c0_32 = arith.constant 0 : index
    %c0_33 = arith.constant 0 : index
    %47 = vector.load %arg11[%c0_32, %c0_33] : memref<1x1xf32, #tpu.memory_space<vmem>>, vector<1x1xf32>
    %48 = arith.addf %46, %47 : vector<1x1xf32>
    %c16_i32_34 = arith.constant 16 : i32
    %49 = vector.broadcast %c16_i32_34 : i32 to vector<1x128xi32>
    %50 = arith.cmpi slt, %24, %49 : vector<1x128xi32>
    %c16_i32_35 = arith.constant 16 : i32
    %51 = vector.broadcast %c16_i32_35 : i32 to vector<1x128xi32>
    %52 = arith.cmpi eq, %24, %51 : vector<1x128xi32>
    %cst_36 = arith.constant 0.000000e+00 : f32
    %53 = vector.shape_cast %48 : vector<1x1xf32> to vector<1x1xf32>
    %54 = vector.broadcast %53 : vector<1x1xf32> to vector<1x128xf32>
    %55 = vector.broadcast %cst_36 : f32 to vector<1x128xf32>
    %56 = arith.select %52, %54, %55 : vector<1x128xi1>, vector<1x128xf32>
    %57 = arith.select %50, %36, %56 : vector<1x128xi1>, vector<1x128xf32>
    %c0_37 = arith.constant 0 : index
    %c0_38 = arith.constant 0 : index
    %58 = vector.load %arg12[%c0_37, %c0_38] : memref<1x128xf32, #tpu.memory_space<vmem>>, vector<1x128xf32>
    tpu.vector_store %arg12[%c0_37, %c0_38], %57 {strides = array<i32>} : memref<1x128xf32, #tpu.memory_space<vmem>>, vector<1x128xf32>,
    return
  }
}

</mosaic_0001>

<bundles_post_ra>
// kernel: tpu_custom_call.1
= control target key start
LH: loop header
LB: loop body
LE: loop exit
PB: predicated region body
PF: predicated region fallthrough
CT: control target
= control target key end

     0   :  { %s761_s0 = inlined_call_operand.hbm [shape: f32[128,128], index: 0, kind: input, shape index: {}]   ;;  %s762_s1 = inlined_call_operand.vmem [shape: f32[8,128], index: 1, kind: input, shape index: {}]   ;;  %s763_s2 = inlined_call_operand.vmem [shape: f32[32,8], index: 2, kind: input, shape index: {}]   ;;  %s764_s3 = inlined_call_operand.vmem [shape: f32[32,1], index: 3, kind: input, shape index: {}]   ;;  %s765_s4 = inlined_call_operand.vmem [shape: f32[32,32], index: 4, kind: input, shape index: {}]   ;;  %s766_s5 = inlined_call_operand.vmem [shape: f32[32,1], index: 5, kind: input, shape index: {}]   ;;  %s767_s6 = inlined_call_operand.vmem [shape: f32[16,32], index: 6, kind: input, shape index: {}]   ;;  %s768_s7 = inlined_call_operand.vmem [shape: f32[16,1], index: 7, kind: input, shape index: {}]   ;;  %s769_s8 = inlined_call_operand.vmem [shape: f32[16,1], index: 8, kind: input, shape index: {}]   ;;  %s770_s9 = inlined_call_operand.<no memory space> [shape: f32[1,1], index: 9, kind: input, shape index: {}]   ;;  %s771_s10 = inlined_call_operand.vmem [shape: f32[16,1], index: 10, kind: input, shape index: {}]   ;;  %s772_s12 = inlined_call_operand.hbm [shape: f32[1,128], index: 12, kind: output, shape index: {}]   ;;  %s773_s11 = inlined_call_operand.<no memory space> [shape: f32[1,1], index: 11, kind: input, shape index: {}]  }
   0x1   :  { %v17_v0 = vstv %s770_s9  ;;  %v19_v1 = vstv %s773_s11 }
   0x2   :  { %18 = vst [vmem:[#allocation2] sm:$0x1] %v17_v0 }
   0x3   :  { %20 = vst [vmem:[#allocation3] sm:$0x1] %v19_v1 }
   0x4   :  { %21 = vsyncpa [#allocation5], 0 }
   0x5   :  { %22 = vsyncpa [#allocation6], 0  ;;  %s27_s27 = sshll.u32 %s761_s0, 4  ;;  %s508_s28 = smov [#allocation4]   ;;  %s28_s27 = int_to_ptr.hbm [resolvable:$true] %s27_s27 }
   0x6   :  { %s29_s29 = sshll.u32 %s508_s28, 4  ;;  %s509_s30 = smov 128   ;;  %s30_s29 = int_to_ptr.vmem [resolvable:$true] %s29_s29 }
   0x7   :  { %s510_s13 = smov 8  }
   0x8   :  { %35 = dma.hbm_to_vmem [thread:$0]  %s28_s27, 2048, %s30_s29, [#allocation5], %s509_s30, %s509_s30, %s510_s13  }
   0x9   :  { %504 = dma.done.wait [#allocation5], 2048  }
   0xa   :  { %505 = vsyncadd [#allocation5], 4294965248  ;;  %v589_v2 = vld [vmem:[#allocation4 + $0x78] sm:$0xff]  ;;  %v591_v3 = vld [vmem:[#allocation4 + $0x70] sm:$0xff]  ;;  %v511_v4 = vmov 0   ;;  %vm127_vm0 = vcmask 64512  }
   0xb   :  { %87 = vmatpush.msra.mxu0 %v589_v2  ;;  %451 = vset.pattern.permute.xlu0 %v511_v4  ;;  %v594_v5 = vld [vmem:[#allocation4 + $0x68] sm:$0xff]  ;;  %v598_v6 = vld [vmem:[#allocation4 + $0x60] sm:$0xff]  ;;  %v605_v8 = vld [vmem:[#allocation4 + $0x58] sm:$0xff]  ;;  %vm230_vm1 = vcmask 261120   ;;  %vm395_vm4 = vcmask 7168  }
   0xc   :  { %452 = vset.pattern.permute.xlu1 %v511_v4  ;;  %181 = vmatpush.msra.mxu2 %v589_v2  ;;  %v83_v7 = vld [vmem:[%s764_s3] sm:$0xff]  ;;  %v609_v9 = vld [vmem:[#allocation4 + $0x50] sm:$0xff]  ;;  %v613_v10 = vld [vmem:[#allocation4 + $0x48] sm:$0xff] }
   0xd   :  { %88 = vmatpush.msra.mxu0 %v591_v3  ;;  %453 = vset.pattern.permute.xlu2 %v511_v4  ;;  %v84_v11 = vld [vmem:[%s764_s3 + $0x8] sm:$0xff]  ;;  %v624_v13 = vld [vmem:[#allocation4 + $0x38] sm:$0xff]  ;;  %v628_v14 = vld [vmem:[#allocation4 + $0x30] sm:$0xff] }
   0xe   :  { %182 = vmatpush.msra.mxu2 %v591_v3  ;;  %109 = vperm.xlu0 %451, %v83_v7   ;;  %v620_v12 = vld [vmem:[#allocation4 + $0x40] sm:$0xff]  ;;  %v632_v15 = vld [vmem:[#allocation4 + $0x28] sm:$0xff]  ;;  %v643_v18 = vld [vmem:[#allocation4 + $0x18] sm:$0xff] }
   0xf   :  { %89 = vmatpush.msra.mxu0 %v594_v5  ;;  %v178_v16 = vld [vmem:[%s766_s5 + $0x8] sm:$0xff]  ;;  %v647_v19 = vld [vmem:[#allocation4 + $0x10] sm:$0xff]  ;;  %v78_v23 = vld [vmem:[%s762_s1] sm:$0xff] }
  0x10   :  { %183 = vmatpush.msra.mxu2 %v594_v5  ;;  %v639_v17 = vld [vmem:[#allocation4 + $0x20] sm:$0xff]  ;;  %v651_v20 = vld [vmem:[#allocation4 + $0x8] sm:$0xff]  ;;  %v368_v27 = vld [vmem:[#allocation2] sm:$0x1] }
  0x11   :  { %90 = vmatpush.msra.mxu0 %v598_v6  ;;  %v279_v21 = vld [vmem:[%s768_s7 + $0x8] sm:$0xff]  ;;  %v347_v24 = vld [vmem:[%s769_s8] sm:$0xff]  ;;  %v85_v26 = vld [vmem:[%s764_s3 + $0x10] sm:$0xff] }
  0x12   :  { %184 = vmatpush.msra.mxu2 %v598_v6  ;;  %v658_v22 = vld [vmem:[#allocation4] sm:$0xff]  ;;  %119 = vperm.xlu1 %452, %v85_v26   ;;  %v86_v28 = vld [vmem:[%s764_s3 + $0x18] sm:$0xff]  ;;  %v81_v33 = vld [vmem:[%s763_s2 + $0x10] sm:$0xff]  ;;  %s423_s3 = sshll.u32 %s772_s12, 4  ;;  %s424_s3 = int_to_ptr.hbm [resolvable:$true] %s423_s3 }
  0x13   :  { %91 = vmatpush.msra.mxu0 %v605_v8  ;;  %v348_v25 = vld [vmem:[%s769_s8 + $0x8] sm:$0xff]  ;;  %v177_v29 = vld [vmem:[%s766_s5] sm:$0xff]  ;;  %v82_v34 = vld [vmem:[%s763_s2 + $0x18] sm:$0xff] }
  0x14   :  { %185 = vmatpush.msra.mxu2 %v605_v8  ;;  %v79_v30 = vld [vmem:[%s763_s2] sm:$0xff]  ;;  %v80_v32 = vld [vmem:[%s763_s2 + $0x8] sm:$0xff]  ;;  %v180_v55 = vld [vmem:[%s766_s5 + $0x18] sm:$0xff] }
  0x15   :  { %92 = vmatpush.msra.mxu0 %v609_v9  ;;  %227 = vperm.xlu2 %453, %v180_v55   ;;  %v173_v56 = vld [vmem:[%s765_s4] sm:$0xff]  ;;  %v179_v57 = vld [vmem:[%s766_s5 + $0x10] sm:$0xff]  ;;  %v174_v58 = vld [vmem:[%s765_s4 + $0x8] sm:$0xff] }
  0x16   :  { %186 = vmatpush.msra.mxu2 %v609_v9  ;;  %114 = vperm.xlu0 %451, %v84_v11   ;;  %v278_v59 = vld [vmem:[%s768_s7] sm:$0xff]  ;;  %v175_v60 = vld [vmem:[%s765_s4 + $0x10] sm:$0xff]  ;;  %v176_v61 = vld [vmem:[%s765_s4 + $0x18] sm:$0xff] }
  0x17   :  { %93 = vmatpush.msra.mxu0 %v613_v10 }
  0x18   :  { %187 = vmatpush.msra.mxu2 %v613_v10 }
  0x19   :  { %94 = vmatpush.msra.mxu0 %v620_v12 }
  0x1a   :  { %188 = vmatpush.msra.mxu2 %v620_v12  ;;  %124 = vperm.xlu1 %452, %v86_v28  }
  0x1b   :  { %95 = vmatpush.msra.mxu0 %v624_v13 }
  0x1c   :  { %189 = vmatpush.msra.mxu2 %v624_v13 }
  0x1d   :  { %96 = vmatpush.msra.mxu0 %v628_v14  ;;  %222 = vperm.xlu2 %453, %v179_v57  }
  0x1e   :  { %190 = vmatpush.msra.mxu2 %v628_v14  ;;  %217 = vperm.xlu0 %451, %v178_v16  }
  0x1f   :  { %97 = vmatpush.msra.mxu0 %v632_v15 }
  0x20   :  { %191 = vmatpush.msra.mxu2 %v632_v15 }
  0x21   :  { %98 = vmatpush.msra.mxu0 %v639_v17 }
  0x22   :  { %192 = vmatpush.msra.mxu2 %v639_v17  ;;  %212 = vperm.xlu1 %452, %v177_v29  }
  0x23   :  { %99 = vmatpush.msra.mxu0 %v643_v18 }
  0x24   :  { %193 = vmatpush.msra.mxu2 %v643_v18 }
  0x25   :  { %100 = vmatpush.msra.mxu0 %v647_v19  ;;  %311 = vperm.xlu2 %453, %v278_v59  }
  0x26   :  { %194 = vmatpush.msra.mxu2 %v647_v19  ;;  %316 = vperm.xlu0 %451, %v279_v21  }
  0x27   :  { %101 = vmatpush.msra.mxu0 %v651_v20 }
  0x28   :  { %195 = vmatpush.msra.mxu2 %v651_v20 }
  0x29   :  { %102 = vmatpush.msra.mxu0 %v658_v22 }
  0x2a   :  { %103 = vmatmul.f32.vlgmr.msra.gmra.mxu0 %v78_v23  ;;  %196 = vmatpush.msra.mxu2 %v658_v22 }
  0x2e   :  { %351 = vperm.xlu0 %451, %v347_v24   ;;  %v512_v24 = vmov 0.0  }
  0x36   :  { %356 = vperm.xlu0 %451, %v348_v25  }
  0x3e   :  { %371 = vperm.xlu0 %451, %v368_v27  }
  0x6f   :  { %v228_v0 = vpop.permute.xlu2 %227 }
  0x80   :  { %v110_v35 = vpop.permute.xlu0 %109 }
  0x84   :  { %v120_v43 = vpop.permute.xlu1 %119 }
  0x88   :  { %v115_v39 = vpop.permute.xlu0 %114 }
  0x8c   :  { %v125_v47 = vpop.permute.xlu1 %124 }
  0xa7   :  { %v104_v31 = vpop.f32.mrf.mxu0 }
  0xa8   :  { %155 = vmatpush.msra.mxu1 %v104_v31 }
  0xa9   :  { %433 = vmatmul.msk.f32.vlgmr.msra.gmra.mxu1 %vm127_vm0, %v79_v30 }
  0xb1   :  { %434 = vmatmul.msk.f32.gmra.mxu1 %vm127_vm0, %v80_v32 }
  0xb9   :  { %435 = vmatmul.msk.f32.gmra.mxu1 %vm127_vm0, %v81_v33 }
  0xc1   :  { %436 = vmatmul.msk.f32.gmra.mxu1 %vm127_vm0, %v82_v34 }
 0x126   :  { %v157_v36 = vpop.f32.mrf.mxu1 }
 0x127   :  { %v158_v37 = vadd.f32 %v157_v36, %v110_v35  ;;  %v513_v35 = vmov 16.0  }
 0x128   :  { %454 = vrcp.f32 %v513_v35 }
 0x129   :  { %v169_v38 = vmax.f32 %v158_v37, 0.0 }
 0x12b   :  { %197 = vmatmul.f32.vlgmr.msra.gmra.mxu2 %v169_v38 }
 0x12e   :  { %v160_v40 = vpop.f32.mrf.mxu1  ;;  %v455_v36 = vpop.eup %454 }
 0x12f   :  { %v161_v41 = vadd.f32 %v160_v40, %v115_v39  ;;  %v383_v37 = vmul.f32 16.0, %v455_v36  ;;  %vm387_vm3 = vweird.f32 %v455_v36 }
 0x131   :  { %v170_v42 = vmax.f32 %v161_v41, 0.0  ;;  %v384_v38 = vsub.f32 1.0, %v383_v37 }
 0x133   :  { %200 = vmatmul.f32.gmra.mxu2 %v170_v42  ;;  %v385_v39 = vmul.f32 %v455_v36, %v384_v38 }
 0x135   :  { %v386_v40 = vadd.f32 %v455_v36, %v385_v39 }
 0x136   :  { %v163_v44 = vpop.f32.mrf.mxu1 }
 0x137   :  { %v164_v45 = vadd.f32 %v163_v44, %v120_v43  ;;  %v388_v41 = vsel %vm387_vm3, %v455_v36, %v386_v40  ;;  %v391_v44 = vld [vmem:[%s771_s10] sm:$0xff] }
 0x139   :  { %v171_v46 = vmax.f32 %v164_v45, 0.0  ;;  %v392_v45 = vld [vmem:[%s771_s10 + $0x8] sm:$0xff]  ;;  %s514_s10 = smov [#allocation7]  }
 0x13a   :  { %s421_s8 = sshll.u32 %s514_s10, 4  ;;  %s422_s8 = int_to_ptr.vmem [resolvable:$true] %s421_s8 }
 0x13b   :  { %203 = vmatmul.f32.gmra.mxu2 %v171_v46 }
 0x13e   :  { %v166_v48 = vpop.f32.mrf.mxu1 }
 0x13f   :  { %v167_v49 = vadd.f32 %v166_v48, %v125_v47 }
 0x141   :  { %v172_v50 = vmax.f32 %v167_v49, 0.0 }
 0x143   :  { %206 = vmatmul.f32.gmra.mxu2 %v172_v50 }
 0x1ae   :  { %v198_v51 = vpop.f32.mrf.mxu2 }
 0x1b6   :  { %v201_v52 = vpop.f32.mrf.mxu2 }
 0x1be   :  { %v204_v53 = vpop.f32.mrf.mxu2 }
 0x1c6   :  { %v207_v54 = vpop.f32.mrf.mxu2 }
 0x1c7   :  { %255 = vmatpush.msra.mxu3 %v207_v54 }
 0x1c9   :  { %256 = vmatpush.msra.mxu3 %v204_v53 }
 0x1cb   :  { %257 = vmatpush.msra.mxu3 %v201_v52 }
 0x1cd   :  { %258 = vmatpush.msra.mxu3 %v198_v51 }
 0x1ce   :  { %437 = vmatmul.msk.f32.vlgmr.msra.gmra.mxu3 %vm230_vm1, %v173_v56 }
 0x1cf   :  { %319 = vmatpush.msrb.mxu3 %v589_v2  ;;  %v223_v2 = vpop.permute.xlu2 %222 }
 0x1d1   :  { %320 = vmatpush.msrb.mxu3 %v591_v3 }
 0x1d3   :  { %321 = vmatpush.msrb.mxu3 %v594_v5 }
 0x1d5   :  { %322 = vmatpush.msrb.mxu3 %v598_v6  ;;  %v218_v6 = vpop.permute.xlu0 %217 }
 0x1d6   :  { %438 = vmatmul.msk.f32.gmra.mxu3 %vm230_vm1, %v174_v58  ;;  %v405_v58 = vld [vmem:[#allocation3] sm:$0x1] }
 0x1d7   :  { %323 = vmatpush.msrb.mxu3 %v605_v8 }
 0x1d9   :  { %324 = vmatpush.msrb.mxu3 %v609_v9  ;;  %v213_v9 = vpop.permute.xlu1 %212 }
 0x1db   :  { %325 = vmatpush.msrb.mxu3 %v613_v10 }
 0x1dd   :  { %326 = vmatpush.msrb.mxu3 %v620_v12 }
 0x1de   :  { %439 = vmatmul.msk.f32.gmra.mxu3 %vm230_vm1, %v175_v60 }
 0x1df   :  { %327 = vmatpush.msrb.mxu3 %v624_v13 }
 0x1e1   :  { %328 = vmatpush.msrb.mxu3 %v628_v14  ;;  %v276_v14 = vld [vmem:[%s767_s6] sm:$0xff] }
 0x1e3   :  { %329 = vmatpush.msrb.mxu3 %v632_v15  ;;  %v277_v15 = vld [vmem:[%s767_s6 + $0x8] sm:$0xff] }
 0x1e5   :  { %330 = vmatpush.msrb.mxu3 %v639_v17 }
 0x1e6   :  { %440 = vmatmul.msk.f32.gmra.mxu3 %vm230_vm1, %v176_v61 }
 0x1e7   :  { %331 = vmatpush.msrb.mxu3 %v643_v18  ;;  %v317_v18 = vpop.permute.xlu0 %316 }
 0x1e9   :  { %332 = vmatpush.msrb.mxu3 %v647_v19  ;;  %v342_v19 = vlaneseq }
 0x1eb   :  { %333 = vmatpush.msrb.mxu3 %v651_v20  ;;  %v744_v20 = vand.u32 127, %v342_v19 }
 0x1ed   :  { %334 = vmatpush.msrb.mxu3 %v658_v22  ;;  %vm344_vm2 = vcmp.lt.s32.totalorder %v744_v20, 16  ;;  %v312_v22 = vpop.permute.xlu2 %311  ;;  %vm407_vm5 = vcmp.eq.s32.totalorder %v744_v20, 16 }
 0x1ee   :  { %v443_v25 = vsel %vm344_vm2, 1.0, %v512_v24 }
 0x1ef   :  { %v352_v21 = vpop.permute.xlu0 %351 }
 0x1f7   :  { %v357_v30 = vpop.permute.xlu0 %356 }
 0x251   :  { %v260_v62 = vpop.f32.mrf.mxu3 }
 0x252   :  { %v261_v10 = vadd.f32 %v260_v62, %v213_v9 }
 0x254   :  { %v272_v13 = vmax.f32 %v261_v10, 0.0 }
 0x259   :  { %v263_v63 = vpop.f32.mrf.mxu3 }
 0x25a   :  { %v264_v7 = vadd.f32 %v263_v63, %v218_v6 }
 0x25c   :  { %v273_v12 = vmax.f32 %v264_v7, 0.0 }
 0x261   :  { %v266_v1 = vpop.f32.mrf.mxu3 }
 0x262   :  { %v267_v4 = vadd.f32 %v266_v1, %v223_v2  ;;  %v372_v1 = vpop.permute.xlu0 %371 }
 0x264   :  { %v274_v11 = vmax.f32 %v267_v4, 0.0  ;;  %v374_v4 = vperm.slane %v372_v1, 0 }
 0x269   :  { %v269_v3 = vpop.f32.mrf.mxu3 }
 0x26a   :  { %v270_v5 = vadd.f32 %v269_v3, %v228_v0 }
 0x26c   :  { %v275_v8 = vmax.f32 %v270_v5, 0.0 }
 0x26e   :  { %298 = vmatpush.msrb.mxu1 %v275_v8 }
 0x270   :  { %299 = vmatpush.msrb.mxu1 %v274_v11 }
 0x272   :  { %300 = vmatpush.msrb.mxu1 %v273_v12 }
 0x274   :  { %301 = vmatpush.msrb.mxu1 %v272_v13 }
 0x275   :  { %441 = vmatmul.msk.f32.vlgmr.msrb.gmra.mxu1 %vm230_vm1, %v276_v14 }
 0x27d   :  { %442 = vmatmul.msk.f32.gmra.mxu1 %vm230_vm1, %v277_v15 }
 0x2f2   :  { %v303_v16 = vpop.f32.mrf.mxu1 }
 0x2f3   :  { %335 = vmatmul.f32.vlgmr.msrb.gmra.mxu3 %v303_v16 }
 0x2fa   :  { %v306_v17 = vpop.f32.mrf.mxu1 }
 0x2fb   :  { %338 = vmatmul.f32.gmra.mxu3 %v306_v17 }
 0x376   :  { %v336_v23 = vpop.f32.mrf.mxu3 }
 0x377   :  { %v337_v26 = vadd.f32 %v336_v23, %v312_v22 }
 0x379   :  { %v376_v27 = vmul.f32 %v443_v25, %v337_v26  ;;  %v359_v31 = vmul.f32 %v352_v21, %v337_v26 }
 0x37b   :  { %378 = vadd.xlane.f32.xlu1 %v376_v27 }
 0x37e   :  { %v339_v28 = vpop.f32.mrf.mxu3 }
 0x37f   :  { %v340_v29 = vadd.f32 %v339_v28, %v317_v18 }
 0x381   :  { %v360_v32 = vmul.f32 %v357_v30, %v340_v29  ;;  %v377_v33 = vmul.f32 %v443_v25, %v340_v29 }
 0x383   :  { %v361_v34 = vadd.f32 %v360_v32, %v359_v31  ;;  %380 = vadd.xlane.f32.xlu2 %v377_v33 }
 0x385   :  { %v362_v61 = vrot.slane %v361_v34, 4 }
 0x387   :  { %v363_v62 = vadd.f32 %v362_v61, %v361_v34 }
 0x389   :  { %v364_v63 = vrot.slane %v363_v62, 2 }
 0x38b   :  { %v365_v0 = vadd.f32 %v364_v63, %v363_v62 }
 0x38d   :  { %v366_v2 = vrot.slane %v365_v0, 1 }
 0x38f   :  { %v367_v3 = vadd.f32 %v366_v2, %v365_v0 }
 0x391   :  { %v375_v6 = vadd.f32 %v374_v4, %v367_v3 }
 0x3ee   :  { %v379_v42 = vpop.xlane.xlu1 %378 }
 0x3ef   :  { %v389_v43 = vmul.f32 %v388_v41, %v379_v42 }
 0x3f1   :  { %v393_v47 = vmul.f32 %v391_v44, %v389_v43 }
 0x3f3   :  { %v396_v50 = vsel %vm395_vm4, %v393_v47, 0.0 }
 0x3f6   :  { %v381_v46 = vpop.xlane.xlu2 %380 }
 0x3f7   :  { %v390_v48 = vmul.f32 %v388_v41, %v381_v46 }
 0x3f9   :  { %v394_v49 = vmul.f32 %v392_v45, %v390_v48 }
 0x3fb   :  { %v397_v51 = vsel %vm395_vm4, %v394_v49, 0.0 }
 0x3fc   :  { %v398_v52 = vadd.f32 %v397_v51, %v396_v50 }
 0x3fe   :  { %v399_v53 = vrot.slane %v398_v52, 4 }
 0x400   :  { %v400_v54 = vadd.f32 %v399_v53, %v398_v52 }
 0x402   :  { %v401_v55 = vrot.slane %v400_v54, 2 }
 0x404   :  { %v402_v56 = vadd.f32 %v401_v55, %v400_v54 }
 0x406   :  { %v403_v57 = vrot.slane %v402_v56, 1 }
 0x408   :  { %v404_v59 = vadd.f32 %v403_v57, %v402_v56 }
 0x40a   :  { %v406_v60 = vadd.f32 %v405_v58, %v404_v59 }
 0x40c   :  { %410 = vperm.xlu0 %451, %v406_v60  }
 0x47e   :  { %v411_v5 = vpop.permute.xlu0 %410 }
 0x47f   :  { %v413_v7 = vsel %vm407_vm5, %v411_v5, 0.0 }
 0x480   :  { %v414_v8 = vsel %vm344_vm2, %v375_v6, %v413_v7 }
 0x481   :  { %415 = vst [vmem:[#allocation7] sm:$0x1] %v414_v8 }
 0x482   :  { %426 = dma.vmem_to_hbm [thread:$0]  %s422_s8, 16, %s424_s3, [#allocation6]  }
 0x483   :  { %506 = dma.done.wait [#allocation6], 16  }
 0x484   :  { %507 = vsyncadd [#allocation6], 4294967280 }
 0x485   :  { %431 = vsyncpa [#allocation5], 1 }
 0x486   :  { %432 = vsyncpa [#allocation6], 1 }

</bundles_post_ra>
